<compile_context>
chip_gen: v6e
topology: v6e:2x2x1
jax: 0.10.0
libtpu: 0.0.40
codegen_flags: <defaults>
</compile_context>

<pallas_src>
import functools

import jax
import jax.numpy as jnp
from jax import lax
from jax.experimental import pallas as pl
from jax.experimental.pallas import tpu as pltpu

_MIB = 1024 * 1024


def _vmem_limit_bytes():
    """Scoped-VMEM limit per chip generation: ~half of physical VMEM, clamped to [32, 64] MiB."""
    try:
        cap = int(pltpu.get_tpu_info().vmem_capacity_bytes)
    except Exception:
        cap = 64 * _MIB  # conservative fallback (treat like v7x)
    return int(min(64 * _MIB, max(32 * _MIB, cap // 2)))


def _choose_block(n, c, hw, itemsize, vmem_limit):
    """Pick (nb, lane_tile) for a (nb, C, tile) block under a per-block VMEM budget.

    Per-block VMEM estimate: 2x double-buffered input + 2x double-buffered output in x's
    dtype, plus ~3 block-sized f32 compute temporaries inside the body.
    """
    budget = (vmem_limit * 7) // 10           # leave ~30% headroom for misc scratch
    per_elem = 4 * itemsize + 3 * 4
    max_elems = max(c * 128, budget // per_elem)

    hw_chunks = pl.cdiv(hw, 128)              # spatial extent in 128-lane chunks
    lane_chunks = min(hw_chunks, max(1, max_elems // (c * 128)))
    tile = lane_chunks * 128

    # Fold batch only when the whole spatial axis fits in one tile. nb is restricted to
    # divisors of N so the batch grid axis never needs edge masking (N is small anyway).
    nb = 1
    if lane_chunks == hw_chunks and n > 1:
        for d in sorted((d for d in range(1, n + 1) if n % d == 0), reverse=True):
            if d * c * tile <= max_elems:
                nb = d
                break

    # Megacore (v7x: 2 TCs). If everything collapsed to a single grid step and the block is
    # large enough that DMA time dominates the ~0.35us per-step overhead, split the spatial
    # axis into two even "parallel" steps. Harmless on single-TC v5e/v6e.
    block_bytes = nb * c * tile * itemsize
    if (n // nb) * pl.cdiv(hw, tile) == 1 and hw_chunks >= 2 and block_bytes >= 512 * 1024:
        lane_chunks = pl.cdiv(hw_chunks, 2)
        tile = lane_chunks * 128

    return nb, tile


def _layernorm_kernel(x_ref, g_ref, b_ref, o_ref, *, eps, inv_c):
    # x_ref: (nb, C, T) block; g_ref/b_ref: (1, C, 1).
    x = x_ref[...].astype(jnp.float32)                    # no-op for f32 inputs
    s = jnp.sum(x, axis=1, keepdims=True)                 # (nb, 1, T)
    ss = jnp.sum(x * x, axis=1, keepdims=True)            # one pass over x for both moments
    mean = s * inv_c
    var = jnp.maximum(ss * inv_c - mean * mean, 0.0)      # clamp f32 cancellation
    inv = lax.rsqrt(var + eps)                            # unbiased=False variance
    g = g_ref[...].astype(jnp.float32)                    # (1, C, 1)
    b = b_ref[...].astype(jnp.float32)
    # Chain so the (1,C,1) params broadcast against existing block-sized values
    # (no separately materialized inv*g block temp).
    o_ref[...] = (((x - mean) * inv) * g + b).astype(o_ref.dtype)


def layernorm_nchw(x, g, b, eps=1e-5):
    """x: (N, C, H, W); g, b: (1, C, 1, 1). Returns (N, C, H, W)."""
    N, C, H, W = x.shape
    HW = H * W

    x3 = x.reshape(N, C, HW)       # contiguous metadata-only reshape
    g3 = g.reshape(1, C, 1)
    b3 = b.reshape(1, C, 1)

    itemsize = jnp.dtype(x.dtype).itemsize
    vmem_limit = _vmem_limit_bytes()
    nb, tile = _choose_block(N, C, HW, itemsize, vmem_limit)
    assert tile % 128 == 0 and N % nb == 0

    grid = (N // nb, pl.cdiv(HW, tile))   # ragged last spatial block is masked by Pallas

    cost = pl.CostEstimate(
        flops=9 * N * C * HW,
        transcendentals=N * HW,
        bytes_accessed=2 * N * C * HW * itemsize + 2 * C * jnp.dtype(g.dtype).itemsize,
    )

    out3 = pl.pallas_call(
        functools.partial(_layernorm_kernel, eps=float(eps), inv_c=1.0 / C),
        out_shape=jax.ShapeDtypeStruct((N, C, HW), x.dtype),
        grid_spec=pltpu.PrefetchScalarGridSpec(
            num_scalar_prefetch=0,
            grid=grid,
            in_specs=[
                pl.BlockSpec((nb, C, tile), lambda n, s: (n, 0, s)),
                pl.BlockSpec((1, C, 1), lambda n, s: (0, 0, 0)),
                pl.BlockSpec((1, C, 1), lambda n, s: (0, 0, 0)),
            ],
            out_specs=pl.BlockSpec((nb, C, tile), lambda n, s: (n, 0, s)),
        ),
        compiler_params=pltpu.CompilerParams(
            dimension_semantics=("parallel", "parallel"),
            vmem_limit_bytes=vmem_limit,
        ),
        cost_estimate=cost,
    )(x3, g3, b3)

    return out3.reshape(N, C, H, W)


def layernorm_ref(x, g, b, eps=1e-5):
    mean = jnp.mean(x, axis=1, keepdims=True)
    var = jnp.mean((x - mean) ** 2, axis=1, keepdims=True)
    return (x - mean) / jnp.sqrt(var + eps) * g + b


if __name__ == "__main__":
    key = jax.random.PRNGKey(0)
    kx, kg, kb, kx2 = jax.random.split(key, 4)

    N, C, H, W = 2, 4, 16, 16
    x = jax.random.normal(kx, (N, C, H, W), dtype=jnp.float32)

    # Module init is ones/zeros; perturb slightly so the scale/shift path is exercised.
    g = jnp.ones((1, C, 1, 1), jnp.float32) + 0.1 * jax.random.normal(kg, (1, C, 1, 1), jnp.float32)
    b = jnp.zeros((1, C, 1, 1), jnp.float32) + 0.1 * jax.random.normal(kb, (1, C, 1, 1), jnp.float32)

    out = jax.block_until_ready(layernorm_nchw(x, g, b))
    ref = layernorm_ref(x, g, b)
    assert out.shape == (N, C, H, W)
    assert jnp.allclose(out, ref, atol=1e-4, rtol=1e-4), "mismatch vs reference"

    # Also exercise the ragged (HW % 128 != 0) path, e.g. an 8x8 UNet bottleneck stage.
    x2 = jax.random.normal(kx2, (N, C, 8, 8), dtype=jnp.float32)
    out2 = jax.block_until_ready(layernorm_nchw(x2, g, b))
    ref2 = layernorm_ref(x2, g, b)
    assert out2.shape == (N, C, 8, 8)
    assert jnp.allclose(out2, ref2, atol=1e-4, rtol=1e-4), "mismatch vs reference (ragged path)"

    print("KERNEL_OK")
</pallas_src>

<mosaic_0001>
module attributes {stable_mosaic.version = 11 : i64} {
  func.func @_layernorm_kernel(%arg0: i32, %arg1: i32, %arg2: memref<2x4x256xf32, #tpu.memory_space<vmem>>, %arg3: memref<1x4x1xf32, #tpu.memory_space<vmem>>, %arg4: memref<1x4x1xf32, #tpu.memory_space<vmem>>, %arg5: memref<2x4x256xf32, #tpu.memory_space<vmem>>) attributes {dimension_semantics = [#tpu.dimension_semantics<parallel>, #tpu.dimension_semantics<parallel>], iteration_bounds = array<i64: 1, 1>, scalar_prefetch = 0 : i64, scratch_operands = 0 : i64, tpu.core_type = #tpu.core_type<tc>, window_params = [{transform_indices = @transform_0, window_bounds = array<i64: 2, 4, 256>}, {pipeline_mode = #tpu.pipeline_mode<synchronous>, transform_indices = @transform_1, window_bounds = array<i64: 1, 4, 1>}, {pipeline_mode = #tpu.pipeline_mode<synchronous>, transform_indices = @transform_2, window_bounds = array<i64: 1, 4, 1>}, {transform_indices = @transform_3, window_bounds = array<i64: 2, 4, 256>}]} {
    %c0 = arith.constant 0 : index
    %c0_0 = arith.constant 0 : index
    %c0_1 = arith.constant 0 : index
    %0 = vector.load %arg2[%c0, %c0_0, %c0_1] : memref<2x4x256xf32, #tpu.memory_space<vmem>>, vector<2x4x256xf32>
    %cst = arith.constant dense<0.000000e+00> : vector<2x256xf32>
    %1 = vector.multi_reduction <add>, %0, %cst [1] : vector<2x4x256xf32> to vector<2x256xf32>
    %2 = vector.shape_cast %1 : vector<2x256xf32> to vector<2x1x256xf32>
    %3 = arith.mulf %0, %0 : vector<2x4x256xf32>
    %cst_2 = arith.constant dense<0.000000e+00> : vector<2x256xf32>
    %4 = vector.multi_reduction <add>, %3, %cst_2 [1] : vector<2x4x256xf32> to vector<2x256xf32>
    %5 = vector.shape_cast %4 : vector<2x256xf32> to vector<2x1x256xf32>
    %cst_3 = arith.constant 2.500000e-01 : f32
    %6 = vector.broadcast %cst_3 : f32 to vector<2x1x256xf32>
    %7 = arith.mulf %2, %6 : vector<2x1x256xf32>
    %cst_4 = arith.constant 2.500000e-01 : f32
    %8 = vector.broadcast %cst_4 : f32 to vector<2x1x256xf32>
    %9 = arith.mulf %5, %8 : vector<2x1x256xf32>
    %10 = arith.mulf %7, %7 : vector<2x1x256xf32>
    %11 = arith.subf %9, %10 : vector<2x1x256xf32>
    %cst_5 = arith.constant 0.000000e+00 : f32
    %12 = vector.broadcast %cst_5 : f32 to vector<2x1x256xf32>
    %13 = arith.maximumf %11, %12 : vector<2x1x256xf32>
    %cst_6 = arith.constant 9.99999974E-6 : f32
    %14 = vector.broadcast %cst_6 : f32 to vector<2x1x256xf32>
    %15 = arith.addf %13, %14 : vector<2x1x256xf32>
    %16 = math.rsqrt %15 : vector<2x1x256xf32>
    %c0_7 = arith.constant 0 : index
    %c0_8 = arith.constant 0 : index
    %c0_9 = arith.constant 0 : index
    %17 = vector.load %arg3[%c0_7, %c0_8, %c0_9] : memref<1x4x1xf32, #tpu.memory_space<vmem>>, vector<1x4x1xf32>
    %c0_10 = arith.constant 0 : index
    %c0_11 = arith.constant 0 : index
    %c0_12 = arith.constant 0 : index
    %18 = vector.load %arg4[%c0_10, %c0_11, %c0_12] : memref<1x4x1xf32, #tpu.memory_space<vmem>>, vector<1x4x1xf32>
    %19 = vector.broadcast %7 : vector<2x1x256xf32> to vector<2x4x256xf32>
    %20 = arith.subf %0, %19 : vector<2x4x256xf32>
    %21 = vector.broadcast %16 : vector<2x1x256xf32> to vector<2x4x256xf32>
    %22 = arith.mulf %20, %21 : vector<2x4x256xf32>
    %23 = vector.broadcast %17 : vector<1x4x1xf32> to vector<2x4x256xf32>
    %24 = arith.mulf %22, %23 : vector<2x4x256xf32>
    %25 = vector.broadcast %18 : vector<1x4x1xf32> to vector<2x4x256xf32>
    %26 = arith.addf %24, %25 : vector<2x4x256xf32>
    %c0_13 = arith.constant 0 : index
    %c0_14 = arith.constant 0 : index
    %c0_15 = arith.constant 0 : index
    %27 = vector.load %arg5[%c0_13, %c0_14, %c0_15] : memref<2x4x256xf32, #tpu.memory_space<vmem>>, vector<2x4x256xf32>
    tpu.vector_store %arg5[%c0_13, %c0_14, %c0_15], %26 {strides = array<i32>} : memref<2x4x256xf32, #tpu.memory_space<vmem>>, vector<2x4x256xf32>,
    return
  }
  func.func @transform_0(%arg0: i32, %arg1: i32) -> (i32, i32, i32) {
    %c0_i32 = arith.constant 0 : i32
    %c0_i32_0 = arith.constant 0 : i32
    return %arg0, %c0_i32, %arg1 : i32, i32, i32
  }
  func.func @transform_1(%arg0: i32, %arg1: i32) -> (i32, i32, i32) {
    %c0_i32 = arith.constant 0 : i32
    %c0_i32_0 = arith.constant 0 : i32
    %c0_i32_1 = arith.constant 0 : i32
    %c0_i32_2 = arith.constant 0 : i32
    return %c0_i32, %c0_i32_0, %c0_i32_1 : i32, i32, i32
  }
  func.func @transform_2(%arg0: i32, %arg1: i32) -> (i32, i32, i32) {
    %c0_i32 = arith.constant 0 : i32
    %c0_i32_0 = arith.constant 0 : i32
    %c0_i32_1 = arith.constant 0 : i32
    %c0_i32_2 = arith.constant 0 : i32
    return %c0_i32, %c0_i32_0, %c0_i32_1 : i32, i32, i32
  }
  func.func @transform_3(%arg0: i32, %arg1: i32) -> (i32, i32, i32) {
    %c0_i32 = arith.constant 0 : i32
    %c0_i32_0 = arith.constant 0 : i32
    return %arg0, %c0_i32, %arg1 : i32, i32, i32
  }
}

</mosaic_0001>

<bundles_post_ra>
// kernel: tpu_custom_call.1
= control target key start
LH: loop header
LB: loop body
LE: loop exit
PB: predicated region body
PF: predicated region fallthrough
CT: control target
= control target key end

     0   :  { %8 = vsyncpa [#allocation3], 0  ;;  %s328_s0 = inlined_call_operand.hbm [shape: f32[2,4,256], index: 0, kind: input, shape index: {}]   ;;  %s329_s1 = inlined_call_operand.vmem [shape: f32[1,4,1], index: 1, kind: input, shape index: {}]   ;;  %s330_s2 = inlined_call_operand.vmem [shape: f32[1,4,1], index: 2, kind: input, shape index: {}]   ;;  %s331_s3 = inlined_call_operand.hbm [shape: f32[2,4,256], index: 3, kind: output, shape index: {}]  }
   0x1   :  { %9 = vsyncpa [#allocation4], 0  ;;  %s260_s12 = smov [#allocation2]  }
   0x2   :  { %s15_s13 = sshll.u32 %s260_s12, 4  ;;  %s16_s13 = int_to_ptr.vmem [resolvable:$true] %s15_s13 }
   0x3   :  { %s224_s14 = scalar_lea.vmem %s16_s13, 256  ;;  %p229_p1 = scmp.lt.s32.totalorder %s16_s13, %s16_s13 }
   0x4   :  { %p225_p0 = scmp.ne.s32.totalorder %s16_s13, %s224_s14  ;;  %p230_p2 = scmp.lt.s32.totalorder %s224_s14, %s224_s14 }
   0x6   :  { %p231_p3 = por %p230_p2, %p229_p1 }
   0x8   :  { %p232_p4 = pnand %p231_p3, %p225_p0 }
   0xa   :  { %235 = shalt.err (!%p232_p4)
}
   0xb   :  { %s261_s15 = smov 128   ;;  %s262_s16 = smov 8  }
   0xc   :  { %21 = dma.hbm_to_vmem [thread:$0]  %s328_s0, 256, %s16_s13, [#allocation3], %s261_s15, %s261_s15, %s262_s16  }
   0xd   :  { %256 = dma.done.wait [#allocation3], 256  }
   0xe   :  { %257 = vsyncadd [#allocation3], 4294967040  ;;  %v263_v0 = vmov 0   ;;  %v130_v1 = vld [vmem:[%s329_s1] sm:$0xf]  ;;  %v300_v4 = vld [vmem:[#allocation2 + $0x8] sm:$0xff] }
   0xf   :  { %205 = vset.pattern.permute.xlu0 %v263_v0  ;;  %v131_v2 = vld [vmem:[%s330_s2] sm:$0xf]  ;;  %vm37_vm0 = vcmask 1043456   ;;  %v34_v7 = vcombine.high %v300_v4, %v300_v4  ;;  %v67_v8 = vmul.f32 %v300_v4, %v300_v4  ;;  %s265_s0 = smov [#allocation5]  }
  0x10   :  { %154 = vperm.xlu0 %205, %v130_v1   ;;  %v298_v3 = vld [vmem:[#allocation2] sm:$0xff]  ;;  %v52_v12 = vsel %vm37_vm0, %v300_v4, 0.0  ;;  %s187_s1 = sshll.u32 %s265_s0, 4  ;;  %s188_s1 = int_to_ptr.vmem [resolvable:$true] %s187_s1 }
  0x11   :  { %v33_v5 = vcombine.high %v298_v3, %v298_v3  ;;  %v66_v6 = vmul.f32 %v298_v3, %v298_v3  ;;  %v38_v9 = vsel %vm37_vm0, %v298_v3, 0.0  ;;  %v59_v14 = vsel %vm37_vm0, %v34_v7, 0.0  ;;  %s236_s2 = scalar_lea.vmem %s188_s1, 256  ;;  %p241_p6 = scmp.lt.s32.totalorder %s188_s1, %s188_s1 }
  0x12   :  { %v39_v13 = vrot.slane %v38_v9, 4  ;;  %v71_v15 = vcombine.high %v67_v8, %v67_v8  ;;  %v53_v18 = vrot.slane %v52_v12, 4  ;;  %v60_v20 = vrot.slane %v59_v14, 4  ;;  %p237_p5 = scmp.ne.s32.totalorder %s188_s1, %s236_s2  ;;  %p242_p7 = scmp.lt.s32.totalorder %s236_s2, %s236_s2 }
  0x13   :  { %v45_v10 = vsel %vm37_vm0, %v33_v5, 0.0  ;;  %v70_v11 = vcombine.high %v66_v6, %v66_v6  ;;  %v74_v17 = vsel %vm37_vm0, %v66_v6, 0.0  ;;  %v88_v21 = vsel %vm37_vm0, %v67_v8, 0.0 }
  0x14   :  { %168 = vperm.xlu0 %205, %v131_v2   ;;  %v46_v16 = vrot.slane %v45_v10, 4  ;;  %v40_v22 = vadd.f32 %v39_v13, %v38_v9  ;;  %v75_v23 = vrot.slane %v74_v17, 4  ;;  %v95_v24 = vsel %vm37_vm0, %v71_v15, 0.0  ;;  %p243_p8 = por %p242_p7, %p241_p6 }
  0x15   :  { %v81_v19 = vsel %vm37_vm0, %v70_v11, 0.0  ;;  %v54_v27 = vadd.f32 %v53_v18, %v52_v12  ;;  %v89_v28 = vrot.slane %v88_v21, 4  ;;  %v61_v29 = vadd.f32 %v60_v20, %v59_v14 }
  0x16   :  { %v47_v25 = vadd.f32 %v46_v16, %v45_v10  ;;  %v82_v26 = vrot.slane %v81_v19, 4  ;;  %v96_v30 = vrot.slane %v95_v24, 4  ;;  %v41_v31 = vrot.slane %v40_v22, 2  ;;  %p244_p9 = pnand %p243_p8, %p237_p5 }
  0x17   :  { %v76_v32 = vadd.f32 %v75_v23, %v74_v17  ;;  %v55_v35 = vrot.slane %v54_v27, 2  ;;  %v90_v36 = vadd.f32 %v89_v28, %v88_v21  ;;  %v62_v37 = vrot.slane %v61_v29, 2 }
  0x18   :  { %v48_v33 = vrot.slane %v47_v25, 2  ;;  %v83_v34 = vadd.f32 %v82_v26, %v81_v19  ;;  %v97_v38 = vadd.f32 %v96_v30, %v95_v24  ;;  %v42_v39 = vadd.f32 %v41_v31, %v40_v22 }
  0x19   :  { %v77_v40 = vrot.slane %v76_v32, 2  ;;  %v56_v43 = vadd.f32 %v55_v35, %v54_v27  ;;  %v91_v44 = vrot.slane %v90_v36, 2  ;;  %v63_v45 = vadd.f32 %v62_v37, %v61_v29 }
  0x1a   :  { %v49_v41 = vadd.f32 %v48_v33, %v47_v25  ;;  %v84_v42 = vrot.slane %v83_v34, 2  ;;  %v98_v46 = vrot.slane %v97_v38, 2  ;;  %v43_v47 = vrot.slane %v42_v39, 1 }
  0x1b   :  { %v78_v48 = vadd.f32 %v77_v40, %v76_v32  ;;  %v57_v51 = vrot.slane %v56_v43, 1  ;;  %v92_v52 = vadd.f32 %v91_v44, %v90_v36  ;;  %v64_v53 = vrot.slane %v63_v45, 1 }
  0x1c   :  { %v50_v49 = vrot.slane %v49_v41, 1  ;;  %v85_v50 = vadd.f32 %v84_v42, %v83_v34  ;;  %v99_v54 = vadd.f32 %v98_v46, %v97_v38  ;;  %v44_v55 = vadd.f32 %v43_v47, %v42_v39 }
  0x1d   :  { %v79_v56 = vrot.slane %v78_v48, 1  ;;  %v58_v59 = vadd.f32 %v57_v51, %v56_v43  ;;  %v93_v60 = vrot.slane %v92_v52, 1  ;;  %v65_v61 = vadd.f32 %v64_v53, %v63_v45 }
  0x1e   :  { %v51_v57 = vadd.f32 %v50_v49, %v49_v41  ;;  %v86_v58 = vrot.slane %v85_v50, 1  ;;  %v100_v62 = vrot.slane %v99_v54, 1  ;;  %v102_v0 = vmul.f32 0.25, %v44_v55 }
  0x1f   :  { %v80_v63 = vadd.f32 %v79_v56, %v78_v48  ;;  %v94_v5 = vadd.f32 %v93_v60, %v92_v52  ;;  %v104_v6 = vmul.f32 0.25, %v58_v59  ;;  %v105_v8 = vmul.f32 0.25, %v65_v61 }
  0x20   :  { %v87_v1 = vadd.f32 %v86_v58, %v85_v50  ;;  %v103_v2 = vmul.f32 0.25, %v51_v57  ;;  %v101_v7 = vadd.f32 %v100_v62, %v99_v54  ;;  %v110_v10 = vmul.f32 %v102_v0, %v102_v0 }
  0x21   :  { %v106_v9 = vmul.f32 0.25, %v80_v63  ;;  %v108_v13 = vmul.f32 0.25, %v94_v5  ;;  %v112_v14 = vmul.f32 %v104_v6, %v104_v6  ;;  %v113_v16 = vmul.f32 %v105_v8, %v105_v8 }
  0x22   :  { %v107_v11 = vmul.f32 0.25, %v87_v1  ;;  %v111_v12 = vmul.f32 %v103_v2, %v103_v2  ;;  %v109_v15 = vmul.f32 0.25, %v101_v7  ;;  %v264_v29 = vmov 839922192  }
  0x23   :  { %v114_v17 = vsub.f32 %v106_v9, %v110_v10  ;;  %v116_v19 = vsub.f32 %v108_v13, %v112_v14  ;;  %v157_v30 = vunpack.c.l.s4 %v264_v29  ;;  %v159_v31 = vlaneseq }
  0x24   :  { %v115_v18 = vsub.f32 %v107_v11, %v111_v12  ;;  %v117_v20 = vsub.f32 %v109_v15, %v113_v16  ;;  %v136_v37 = vcombine.low %v102_v0, %v103_v2  ;;  %v137_v38 = vcombine.low %v104_v6, %v105_v8 }
  0x25   :  { %v118_v21 = vmax.f32 %v114_v17, 0.0  ;;  %v120_v23 = vmax.f32 %v116_v19, 0.0  ;;  %v158_v34 = vunpack.c.0.s8 %v157_v30  ;;  %v160_v35 = vshrl.u32 %v159_v31, 7 }
  0x26   :  { %v119_v22 = vmax.f32 %v115_v18, 0.0  ;;  %v121_v24 = vmax.f32 %v117_v20, 0.0  ;;  %v140_v41 = vsub.f32 %v298_v3, %v136_v37  ;;  %v141_v42 = vsub.f32 %v300_v4, %v137_v38 }
  0x27   :  { %v122_v25 = vadd.f32 1e-05, %v118_v21  ;;  %v124_v27 = vadd.f32 1e-05, %v120_v23  ;;  %v161_v40 = vsub.s32 %v158_v34, %v160_v35 }
  0x28   :  { %v123_v26 = vadd.f32 1e-05, %v119_v22  ;;  %v125_v28 = vadd.f32 1e-05, %v121_v24 }
  0x29   :  { %208 = vrsqrt.f32 %v122_v25 }
  0x2a   :  { %210 = vrsqrt.f32 %v123_v26 }
  0x2b   :  { %212 = vrsqrt.f32 %v124_v27 }
  0x2c   :  { %214 = vrsqrt.f32 %v125_v28 }
  0x36   :  { %v209_v32 = vpop.eup %208 }
  0x37   :  { %v211_v33 = vpop.eup %210 }
  0x38   :  { %v213_v36 = vpop.eup %212  ;;  %v146_v43 = vcombine.low %v209_v32, %v211_v33 }
  0x39   :  { %v215_v39 = vpop.eup %214 }
  0x3a   :  { %v147_v44 = vcombine.low %v213_v36, %v215_v39  ;;  %v150_v46 = vmul.f32 %v146_v43, %v140_v41 }
  0x3c   :  { %v151_v47 = vmul.f32 %v147_v44, %v141_v42 }
  0x8b   :  { %v155_v45 = vpop.permute.xlu0 %154 }
  0x8c   :  { %v162_v48 = vrot.slane %v155_v45, %v161_v40 }
  0x8e   :  { %v164_v50 = vmul.f32 %v162_v48, %v150_v46  ;;  %v165_v51 = vmul.f32 %v162_v48, %v151_v47 }
  0x8f   :  { %v169_v49 = vpop.permute.xlu0 %168 }
  0x90   :  { %v176_v52 = vrot.slane %v169_v49, %v161_v40 }
  0x92   :  { %v178_v53 = vadd.f32 %v176_v52, %v164_v50  ;;  %v179_v54 = vadd.f32 %v176_v52, %v165_v51 }
  0x94   :  { %180 = vst [vmem:[#allocation5] sm:$0xff] %v178_v53  ;;  %181 = vst [vmem:[#allocation5 + $0x8] sm:$0xff] %v179_v54 }
  0x95   :  { %247 = shalt.err (!%p244_p9)
}
  0x96   :  { %193 = dma.vmem_to_hbm [thread:$0]  %s188_s1, 256, %s331_s3, [#allocation4], %s261_s15, %s261_s15, %s262_s16  }
  0x97   :  { %258 = dma.done.wait [#allocation4], 256  }
  0x98   :  { %259 = vsyncadd [#allocation4], 4294967040 }
  0x99   :  { %197 = vsyncpa [#allocation3], 1 }
  0x9a   :  { %198 = vsyncpa [#allocation4], 1 }

</bundles_post_ra>
